<compile_context>
chip_gen: v6e
topology: v6e:2x2x1
jax: 0.10.0
libtpu: 0.0.40
codegen_flags: <defaults>
</compile_context>

<pallas_src>
import math

import jax
import jax.numpy as jnp
from jax.experimental import pallas as pl
from jax.experimental.pallas import tpu as pltpu


def _round_up(x, m):
    return (x + m - 1) // m * m


def _lcm(a, b):
    return a * b // math.gcd(a, b)


# --------------------------------------------------------------------------- #
# Kernel 1: hW = h @ W   (computed once, outside the adjacency reduction)
# --------------------------------------------------------------------------- #
def _hw_kernel(h_ref, w_ref, o_ref):
    # in_feats (=32) is a short MXU contraction; left un-padded since this matmul is
    # negligible next to the N^2 aggregation. (Pack feature groups if run at scale.)
    o_ref[...] = jnp.dot(
        h_ref[...], w_ref[...], preferred_element_type=jnp.float32
    ).astype(o_ref.dtype)


# --------------------------------------------------------------------------- #
# Kernel 2: out = relu(((adj + I) @ hW) * norm + bias)
#   grid = (rows // tm, rows // tk); accumulator resident in VMEM across k.
# --------------------------------------------------------------------------- #
def _agg_kernel(adj_ref, hw_ref, norm_ref, b_ref, o_ref, acc_ref):
    k = pl.program_id(1)

    @pl.when(k == 0)
    def _init():
        acc_ref[...] = jnp.zeros_like(acc_ref)

    # bf16 x bf16 on the MXU, f32 accumulation.
    acc_ref[...] += jnp.dot(
        adj_ref[...], hw_ref[...], preferred_element_type=jnp.float32
    )

    @pl.when(k == pl.num_programs(1) - 1)
    def _epilogue():
        # norm / bias / ReLU applied exactly once per output tile, in f32.
        out = acc_ref[...] * norm_ref[...] + b_ref[...]
        o_ref[...] = jnp.maximum(out, 0.0).astype(o_ref.dtype)


def gcn_forward(h, adj, norm, w, b, *, tm=256, tk=256):
    """GCN layer forward.

    h    : (N, in_feats)  f32 node features
    adj  : (N, N)         f32 dense adjacency, adj[i, j] = 1 iff edge j -> i
    norm : (N, 1)         f32 per-node normalization (g.ndata['norm'])
    w    : (in_feats, out_feats) f32
    b    : (1, out_feats) f32
    """
    N, in_feats = h.shape
    out_feats = w.shape[1]

    out_p = _round_up(out_feats, 128)           # lane-dense output columns
    n_pad = _round_up(N, _lcm(tm, tk))          # rows divisible by both tile sizes

    # Fold the self term into the adjacency: (adj @ hW + hW) == (adj + I) @ hW.
    adj_i = adj + jnp.eye(N, dtype=adj.dtype)

    # Zero-padded, dtype-converted operands (0/1 adjacency is exact in bf16).
    h_p = jnp.zeros((n_pad, in_feats), jnp.float32).at[:N].set(h)
    adj_p = jnp.zeros((n_pad, n_pad), jnp.bfloat16).at[:N, :N].set(
        adj_i.astype(jnp.bfloat16))
    norm_p = jnp.zeros((n_pad, 1), jnp.float32).at[:N].set(norm)
    w_p = jnp.zeros((in_feats, out_p), jnp.float32).at[:, :out_feats].set(w)
    b_p = jnp.zeros((1, out_p), jnp.float32).at[:, :out_feats].set(
        b.reshape(1, out_feats))

    # ---- kernel 1: hW = h @ W, emitted directly as bf16 ---------------------
    hw = pl.pallas_call(
        _hw_kernel,
        out_shape=jax.ShapeDtypeStruct((n_pad, out_p), jnp.bfloat16),
        grid_spec=pltpu.PrefetchScalarGridSpec(
            num_scalar_prefetch=0,
            grid=(n_pad // tm,),
            in_specs=[
                pl.BlockSpec((tm, in_feats), lambda i: (i, 0)),
                pl.BlockSpec((in_feats, out_p), lambda i: (0, 0)),
            ],
            out_specs=pl.BlockSpec((tm, out_p), lambda i: (i, 0)),
        ),
        compiler_params=pltpu.CompilerParams(
            dimension_semantics=("parallel",)),
    )(h_p, w_p)

    # ---- kernel 2: tiled (adj + I) @ hW with fused epilogue ------------------
    grid = (n_pad // tm, n_pad // tk)
    out = pl.pallas_call(
        _agg_kernel,
        out_shape=jax.ShapeDtypeStruct((n_pad, out_p), jnp.float32),
        grid_spec=pltpu.PrefetchScalarGridSpec(
            num_scalar_prefetch=0,
            grid=grid,
            in_specs=[
                pl.BlockSpec((tm, tk), lambda i, k: (i, k)),      # adj+I tile (bf16)
                pl.BlockSpec((tk, out_p), lambda i, k: (k, 0)),   # hW k-tile (bf16)
                pl.BlockSpec((tm, 1), lambda i, k: (i, 0)),       # norm row tile
                pl.BlockSpec((1, out_p), lambda i, k: (0, 0)),    # bias
            ],
            out_specs=pl.BlockSpec((tm, out_p), lambda i, k: (i, 0)),
            scratch_shapes=[pltpu.VMEM((tm, out_p), jnp.float32)],
        ),
        compiler_params=pltpu.CompilerParams(
            dimension_semantics=("parallel", "arbitrary")),
    )(adj_p, hw, norm_p, b_p)

    return out[:N, :out_feats]


if __name__ == "__main__":
    N = 512           # number of graph nodes
    in_feats = 32
    out_feats = 64

    key = jax.random.PRNGKey(0)
    k_h, k_adj, k_w, k_b = jax.random.split(key, 4)

    # node features
    h = jax.random.normal(k_h, (N, in_feats), dtype=jnp.float32)

    # random sparse-ish adjacency (~5% density, no self loops), dense float repr
    adj = (jax.random.uniform(k_adj, (N, N)) < 0.05).astype(jnp.float32)
    adj = adj * (1.0 - jnp.eye(N, dtype=jnp.float32))

    # per-node normalization = 1 / (in-degree + 1)   (g.ndata['norm'])
    deg = adj.sum(axis=1, keepdims=True) + 1.0
    norm = 1.0 / deg                                  # (N, 1)

    # deterministic parameter init matching init_parameters():
    # uniform(-stdv, stdv), stdv = 1/sqrt(out_feats)
    stdv = 1.0 / math.sqrt(out_feats)
    w = jax.random.uniform(k_w, (in_feats, out_feats),
                           minval=-stdv, maxval=stdv, dtype=jnp.float32)
    b = jax.random.uniform(k_b, (1, out_feats),
                           minval=-stdv, maxval=stdv, dtype=jnp.float32)

    out = gcn_forward(h, adj, norm, w, b)
    out = jax.block_until_ready(out)

    # reference check in plain JAX (full f32); kernel aggregates in bf16->f32,
    # so use a tolerance consistent with bf16 message precision.
    hw_ref = h @ w
    ref = jnp.maximum((adj @ hw_ref + hw_ref) * norm + b, 0.0)
    assert out.shape == (N, out_feats)
    assert jnp.allclose(out, ref, atol=1e-2, rtol=1e-2), (
        float(jnp.max(jnp.abs(out - ref))))

    print("KERNEL_OK")
</pallas_src>

<mosaic_0001>
module attributes {stable_mosaic.version = 11 : i64} {
  func.func @_hw_kernel(%arg0: i32, %arg1: memref<256x32xf32, #tpu.memory_space<vmem>>, %arg2: memref<32x128xf32, #tpu.memory_space<vmem>>, %arg3: memref<256x128xbf16, #tpu.memory_space<vmem>>) attributes {dimension_semantics = [#tpu.dimension_semantics<parallel>], iteration_bounds = array<i64: 2>, scalar_prefetch = 0 : i64, scratch_operands = 0 : i64, tpu.core_type = #tpu.core_type<tc>, window_params = [{transform_indices = @transform_0, window_bounds = array<i64: 256, 32>}, {pipeline_mode = #tpu.pipeline_mode<synchronous>, transform_indices = @transform_1, window_bounds = array<i64: 32, 128>}, {transform_indices = @transform_2, window_bounds = array<i64: 256, 128>}]} {
    %c0 = arith.constant 0 : index
    %c0_0 = arith.constant 0 : index
    %0 = vector.load %arg1[%c0, %c0_0] : memref<256x32xf32, #tpu.memory_space<vmem>>, vector<256x32xf32>
    %c0_1 = arith.constant 0 : index
    %c0_2 = arith.constant 0 : index
    %1 = vector.load %arg2[%c0_1, %c0_2] : memref<32x128xf32, #tpu.memory_space<vmem>>, vector<32x128xf32>
    %cst = arith.constant dense<0.000000e+00> : vector<256x128xf32>
    %2 = tpu.matmul %0, %1, %cst {dimension_numbers = #tpu.dot_dimension_numbers<[1], [0], [0], [1], [0, 0, 1, 1], [], []>} : vector<256x32xf32>, vector<32x128xf32>, vector<256x128xf32> -> vector<256x128xf32>
    %3 = arith.truncf %2 : vector<256x128xf32> to vector<256x128xbf16>
    %c0_3 = arith.constant 0 : index
    %c0_4 = arith.constant 0 : index
    %4 = vector.load %arg3[%c0_3, %c0_4] : memref<256x128xbf16, #tpu.memory_space<vmem>>, vector<256x128xbf16>
    tpu.vector_store %arg3[%c0_3, %c0_4], %3 {strides = array<i32>} : memref<256x128xbf16, #tpu.memory_space<vmem>>, vector<256x128xbf16>,
    return
  }
  func.func @transform_0(%arg0: i32) -> (i32, i32) {
    %c0_i32 = arith.constant 0 : i32
    %c0_i32_0 = arith.constant 0 : i32
    return %arg0, %c0_i32 : i32, i32
  }
  func.func @transform_1(%arg0: i32) -> (i32, i32) {
    %c0_i32 = arith.constant 0 : i32
    %c0_i32_0 = arith.constant 0 : i32
    %c0_i32_1 = arith.constant 0 : i32
    return %c0_i32, %c0_i32_0 : i32, i32
  }
  func.func @transform_2(%arg0: i32) -> (i32, i32) {
    %c0_i32 = arith.constant 0 : i32
    %c0_i32_0 = arith.constant 0 : i32
    return %arg0, %c0_i32 : i32, i32
  }
}

</mosaic_0001>

<bundles_post_ra>
// kernel: tpu_custom_call.1
= control target key start
LH: loop header
LB: loop body
LE: loop exit
PB: predicated region body
PF: predicated region fallthrough
CT: control target
= control target key end

     0   :  { %7 = vsyncpa [#allocation3], 0  ;;  %s1366_s0 = inlined_call_operand.vmem [shape: f32[512,32], index: 0, kind: input, shape index: {}]   ;;  %s1367_s1 = inlined_call_operand.vmem [shape: f32[32,128], index: 1, kind: input, shape index: {}]   ;;  %s1368_s2 = inlined_call_operand.hbm [shape: bf16[512,128], index: 2, kind: output, shape index: {}]  }
   0x1   :  { %9 = vsyncpa [#allocation3 + $0x1], 0  ;;  %s1164_s9 = smov 0   ;;  %s1166_s10 = smov 0  }
   0x2   :  { %s1168_s11 = smov 0   ;;  %s1170_s12 = smov 0  }
   0x3 LB: > { %s1185_s13 = sadd.s32 4294967295, %s1144_s12   ;;  %s739_s14 = sadd.s32 4294967294, %s1144_s12   ;;  %s1144_s12 = sphi %s1170_s12, %s1374_s12   ;;  %s1140_s11 = sphi %s1168_s11, %s1373_s11   ;;  %s1136_s10 = sphi %s1166_s10, %s1372_s10   ;;  %s1132_s9 = sphi %s1164_s9, %s1371_s9  }
   0x4   : > { %s1189_s15 = sadd.s32 1, %s1144_s12   ;;  %s69_s16 = sadd.s32 1, %s1140_s11 }
   0x5   : > { %s66_s17 = ssub.s32 %s1144_s12, %s1189_s15  ;;  %p79_p0 = scmp.ne.s32.totalorder %s1140_s11, %s1136_s10 }
   0x6   : > { %p67_p1 = scmp.eq.s32.totalorder %s66_s17, 0  ;;  %p80_p2 = scmp.eq.s32.totalorder %s1185_s13, 1 }
   0x7   : > { %p85_p3 = scmp.ne.s32.totalorder %s1136_s10, %s1132_s9  ;;  %p86_p4 = scmp.eq.s32.totalorder %s739_s14, 1 }
   0x8   : > { %s1200_s18 = scalar_select %p67_p1, %s1140_s11, %s69_s16  }
   0x9   : > { %p1202_p5 = por %p80_p2, %p79_p0  ;;  %p1206_p6 = por %p86_p4, %p85_p3 }
   0xa   : > { %p742_p7 = scmp.ge.s32.totalorder %s1144_s12, 1  ;;  %p116_p8 = scmp.lt.s32.totalorder %s1144_s12, 3 }
   0xc   : > { %p117_p9 = pnand %p742_p7, %p116_p8 }
   0xd   : > { %s744_s25 = sshll.u32 (!%p117_p9), %s1185_s13, 5  ;;  %s135_s6 = sand.u32 (!%p117_p9), 1, %s1136_s10  }
   0xe   : > { %120 = sbr.rel (%p117_p9) target bundleno = 268 (0x10c), region = 28  ;;  %p139_p10 = scmp.lt.s32.totalorder (!%p117_p9), %s744_s25, 63 }
   0xf   : > { %s743_s7 = sshll.u32 (!%p117_p9), %s135_s6, 7  ;;  %s847_s14 = sshll.u32 (!%p117_p9), %s1185_s13, 11 }
  0x10   : > { %s1297_s8 = scalar_lea.vmem (!%p117_p9), [#allocation2], %s743_s7  ;;  %s1318_s22 = scalar_lea.hbm (!%p117_p9), %s1368_s2, %s847_s14 }
  0x11   : > { %s677_s16 = sshll.u32 (!%p117_p9), %s1297_s8, 4  ;;  %s1326_s13 = scalar_lea.sflag (!%p117_p9), [#allocation3], %s135_s6  ;;  %s1320_s16 = int_to_ptr.vmem [resolvable:$true] %s677_s16 }
  0x12   : > { %s1084_s23 = scalar_lea.vmem (!%p117_p9), %s1320_s16, 2048  ;;  %s1146_s24 = smov (!%p117_p9), [#allocation2]  }
  0x13   : > { %v180_v0 = vld [vmem:[%s1367_s1 + $0x18] sm:$0xff]  ;;  %v179_v1 = vld [vmem:[%s1367_s1 + $0x10] sm:$0xff]  ;;  %v178_v2 = vld [vmem:[%s1367_s1 + $0x8] sm:$0xff]  ;;  %s1376_s25 = smov (!%p139_p10, %s744_s25), 63  ;;  %vm181_vm0 = vcmask 261120   ;;  %p1085_p11 = scmp.ne.s32.totalorder %s1320_s16, %s1084_s23 }
  0x14   : > { %979 = vmatprep.subr.mxu0 %v180_v0  ;;  %1035 = vmatprep.subr.mxu1 %v180_v0  ;;  %v177_v3 = vld [vmem:[%s1367_s1] sm:$0xff]  ;;  %s745_s30 = sshll.u32 %s1376_s25, 3  ;;  %s1088_s25 = sshll.u32 %s1146_s24, 4  ;;  %s1089_s25 = int_to_ptr.vmem [resolvable:$false] %s1088_s25 }
  0x15   : > { %980 = vmatpush3.msra.mxu0 %v180_v0  ;;  %1039 = vmatpush3.msra.mxu1 %v180_v0  ;;  %s1228_s5 = scalar_lea.vmem %s1366_s0, %s745_s30  ;;  %p1086_p12 = pnand %p1085_p11, %p1202_p5 }
  0x16   : > { %981 = vmatprep.subr.mxu0 %v179_v1  ;;  %1036 = vmatprep.subr.mxu1 %v179_v1  ;;  %v145_v4 = vld [vmem:[%s1228_s5] sm:$0xff]  ;;  %v146_v6 = vld [vmem:[%s1228_s5 + $0x8] sm:$0xff]  ;;  %v147_v8 = vld [vmem:[%s1228_s5 + $0x10] sm:$0xff]  ;;  %s1090_s26 = scalar_lea.vmem %s1089_s25, 4096  ;;  %p1091_p0 = scmp.lt.s32.totalorder %s1320_s16, %s1089_s25 }
  0x17   : > { %982 = vmatpush3.msra.mxu0 %v179_v1  ;;  %1040 = vmatpush3.msra.mxu1 %v179_v1  ;;  %v161_v5 = vld [vmem:[%s1228_s5 + $0x80] sm:$0xff]  ;;  %v162_v7 = vld [vmem:[%s1228_s5 + $0x88] sm:$0xff]  ;;  %v163_v9 = vld [vmem:[%s1228_s5 + $0x90] sm:$0xff]  ;;  %p1087_p13 = pneg %p1086_p12  ;;  %p1092_p1 = scmp.lt.s32.totalorder %s1090_s26, %s1084_s23 }
  0x18   : > { %983 = vmatprep.subr.mxu0 %v178_v2  ;;  %1037 = vmatprep.subr.mxu1 %v178_v2  ;;  %v148_v10 = vld [vmem:[%s1228_s5 + $0x18] sm:$0xff]  ;;  %v149_v12 = vld [vmem:[%s1228_s5 + $0x20] sm:$0xff]  ;;  %v150_v14 = vld [vmem:[%s1228_s5 + $0x28] sm:$0xff] }
  0x19   : > { %984 = vmatpush3.msra.mxu0 %v178_v2  ;;  %1041 = vmatpush3.msra.mxu1 %v178_v2  ;;  %v164_v11 = vld [vmem:[%s1228_s5 + $0x98] sm:$0xff]  ;;  %v165_v13 = vld [vmem:[%s1228_s5 + $0xa0] sm:$0xff]  ;;  %v166_v15 = vld [vmem:[%s1228_s5 + $0xa8] sm:$0xff]  ;;  %p1093_p2 = por %p1092_p1, %p1091_p0 }
  0x1a   : > { %985 = vmatprep.subr.mxu0 %v177_v3  ;;  %1038 = vmatprep.subr.mxu1 %v177_v3  ;;  %v151_v16 = vld [vmem:[%s1228_s5 + $0x30] sm:$0xff]  ;;  %v152_v18 = vld [vmem:[%s1228_s5 + $0x38] sm:$0xff]  ;;  %v153_v20 = vld [vmem:[%s1228_s5 + $0x40] sm:$0xff] }
  0x1b   : > { %986 = vmatpush3.msra.mxu0 %v177_v3  ;;  %1042 = vmatpush3.msra.mxu1 %v177_v3  ;;  %v167_v17 = vld [vmem:[%s1228_s5 + $0xb0] sm:$0xff]  ;;  %v168_v19 = vld [vmem:[%s1228_s5 + $0xb8] sm:$0xff]  ;;  %v169_v21 = vld [vmem:[%s1228_s5 + $0xc0] sm:$0xff]  ;;  %p1094_p3 = pnand %p1093_p2, %p1087_p13 }
  0x1c   : > { %987 = vmatprep.mubr.msk.f32.mxu0 %vm181_vm0, %v145_v4  ;;  %1011 = vmatprep.mubr.msk.f32.mxu1 %vm181_vm0, %v161_v5  ;;  %v154_v22 = vld [vmem:[%s1228_s5 + $0x48] sm:$0xff]  ;;  %v155_v24 = vld [vmem:[%s1228_s5 + $0x50] sm:$0xff]  ;;  %v156_v26 = vld [vmem:[%s1228_s5 + $0x58] sm:$0xff] }
  0x1d   : > { %988 = vmatmul.mubr.msk.f32.vlgmr.msra.gmra.mxu0 %vm181_vm0, %v146_v6  ;;  %1012 = vmatmul.mubr.msk.f32.vlgmr.msra.gmra.mxu1 %vm181_vm0, %v162_v7  ;;  %v170_v23 = vld [vmem:[%s1228_s5 + $0xc8] sm:$0xff]  ;;  %v171_v25 = vld [vmem:[%s1228_s5 + $0xd0] sm:$0xff]  ;;  %v172_v27 = vld [vmem:[%s1228_s5 + $0xd8] sm:$0xff] }
  0x1e   : > { %990 = vmatprep.mubr.msk.f32.mxu0 %vm181_vm0, %v147_v8  ;;  %1014 = vmatprep.mubr.msk.f32.mxu1 %vm181_vm0, %v163_v9  ;;  %v157_v28 = vld [vmem:[%s1228_s5 + $0x60] sm:$0xff]  ;;  %v158_v30 = vld [vmem:[%s1228_s5 + $0x68] sm:$0xff]  ;;  %v159_v32 = vld [vmem:[%s1228_s5 + $0x70] sm:$0xff] }
  0x1f   : > { %v173_v29 = vld [vmem:[%s1228_s5 + $0xe0] sm:$0xff]  ;;  %v174_v31 = vld [vmem:[%s1228_s5 + $0xe8] sm:$0xff]  ;;  %v175_v33 = vld [vmem:[%s1228_s5 + $0xf0] sm:$0xff] }
  0x20   : > { %v160_v34 = vld [vmem:[%s1228_s5 + $0x78] sm:$0xff] }
  0x21   : > { %991 = vmatmul.mubr.msk.f32.gmra.mxu0 %vm181_vm0, %v148_v10  ;;  %1015 = vmatmul.mubr.msk.f32.gmra.mxu1 %vm181_vm0, %v164_v11  ;;  %v176_v35 = vld [vmem:[%s1228_s5 + $0xf8] sm:$0xff] }
  0x22   : > { %993 = vmatprep.mubr.msk.f32.mxu0 %vm181_vm0, %v149_v12  ;;  %1017 = vmatprep.mubr.msk.f32.mxu1 %vm181_vm0, %v165_v13 }
  0x25   : > { %994 = vmatmul.mubr.msk.f32.gmra.mxu0 %vm181_vm0, %v150_v14  ;;  %1018 = vmatmul.mubr.msk.f32.gmra.mxu1 %vm181_vm0, %v166_v15 }
  0x26   : > { %996 = vmatprep.mubr.msk.f32.mxu0 %vm181_vm0, %v151_v16  ;;  %1020 = vmatprep.mubr.msk.f32.mxu1 %vm181_vm0, %v167_v17 }
  0x29   : > { %997 = vmatmul.mubr.msk.f32.gmra.mxu0 %vm181_vm0, %v152_v18  ;;  %1021 = vmatmul.mubr.msk.f32.gmra.mxu1 %vm181_vm0, %v168_v19 }
  0x2a   : > { %999 = vmatprep.mubr.msk.f32.mxu0 %vm181_vm0, %v153_v20  ;;  %1023 = vmatprep.mubr.msk.f32.mxu1 %vm181_vm0, %v169_v21 }
  0x2d   : > { %1000 = vmatmul.mubr.msk.f32.gmra.mxu0 %vm181_vm0, %v154_v22  ;;  %1024 = vmatmul.mubr.msk.f32.gmra.mxu1 %vm181_vm0, %v170_v23 }
  0x2e   : > { %1002 = vmatprep.mubr.msk.f32.mxu0 %vm181_vm0, %v155_v24  ;;  %1026 = vmatprep.mubr.msk.f32.mxu1 %vm181_vm0, %v171_v25 }
  0x31   : > { %1003 = vmatmul.mubr.msk.f32.gmra.mxu0 %vm181_vm0, %v156_v26  ;;  %1027 = vmatmul.mubr.msk.f32.gmra.mxu1 %vm181_vm0, %v172_v27 }
  0x32   : > { %1005 = vmatprep.mubr.msk.f32.mxu0 %vm181_vm0, %v157_v28  ;;  %1029 = vmatprep.mubr.msk.f32.mxu1 %vm181_vm0, %v173_v29 }
  0x35   : > { %1006 = vmatmul.mubr.msk.f32.gmra.mxu0 %vm181_vm0, %v158_v30  ;;  %1030 = vmatmul.mubr.msk.f32.gmra.mxu1 %vm181_vm0, %v174_v31 }
  0x36   : > { %1008 = vmatprep.mubr.msk.f32.mxu0 %vm181_vm0, %v159_v32  ;;  %1032 = vmatprep.mubr.msk.f32.mxu1 %vm181_vm0, %v175_v33 }
  0x39   : > { %1009 = vmatmul.mubr.msk.f32.gmra.mxu0 %vm181_vm0, %v160_v34  ;;  %1033 = vmatmul.mubr.msk.f32.gmra.mxu1 %vm181_vm0, %v176_v35 }
  0xdd   : > { %v989_v36 = vpop.f32.mrf.mxu0  ;;  %v1013_v37 = vpop.f32.mrf.mxu1 }
  0xdf   : > { %v344_v38 = vpop.f32.mrf.mxu0  ;;  %v424_v39 = vpop.f32.mrf.mxu1 }
  0xe0   : > { %v851_v40 = vpack.c.bf16 %v989_v36, %v344_v38  ;;  %v891_v41 = vpack.c.bf16 %v1013_v37, %v424_v39 }
  0xe1   : > { %v992_v42 = vpop.f32.mrf.mxu0  ;;  %v1016_v43 = vpop.f32.mrf.mxu1 }
  0xe2   : > { %852 = vst [vmem:[%s1297_s8] sm:$0xff] %v851_v40   ;;  %935 = vst [vmem:[%s1297_s8 + $0x40] sm:$0xff] %v891_v41  }
  0xe3   : > { %v354_v44 = vpop.f32.mrf.mxu0  ;;  %v434_v45 = vpop.f32.mrf.mxu1 }
  0xe4   : > { %v856_v46 = vpack.c.bf16 %v992_v42, %v354_v44  ;;  %v896_v47 = vpack.c.bf16 %v1016_v43, %v434_v45 }
  0xe5   : > { %v995_v48 = vpop.f32.mrf.mxu0  ;;  %v1019_v49 = vpop.f32.mrf.mxu1 }
  0xe6   : > { %928 = vst [vmem:[%s1297_s8 + $0x8] sm:$0xff] %v856_v46   ;;  %936 = vst [vmem:[%s1297_s8 + $0x48] sm:$0xff] %v896_v47  }
  0xe7   : > { %v364_v50 = vpop.f32.mrf.mxu0  ;;  %v444_v51 = vpop.f32.mrf.mxu1 }
  0xe8   : > { %v861_v52 = vpack.c.bf16 %v995_v48, %v364_v50  ;;  %v901_v53 = vpack.c.bf16 %v1019_v49, %v444_v51 }
  0xe9   : > { %v998_v54 = vpop.f32.mrf.mxu0  ;;  %v1022_v55 = vpop.f32.mrf.mxu1 }
  0xea   : > { %929 = vst [vmem:[%s1297_s8 + $0x10] sm:$0xff] %v861_v52   ;;  %937 = vst [vmem:[%s1297_s8 + $0x50] sm:$0xff] %v901_v53  }
  0xeb   : > { %v374_v56 = vpop.f32.mrf.mxu0  ;;  %v454_v57 = vpop.f32.mrf.mxu1 }
  0xec   : > { %v866_v58 = vpack.c.bf16 %v998_v54, %v374_v56  ;;  %v906_v59 = vpack.c.bf16 %v1022_v55, %v454_v57 }
  0xed   : > { %v1001_v60 = vpop.f32.mrf.mxu0  ;;  %v1025_v61 = vpop.f32.mrf.mxu1 }
  0xee   : > { %930 = vst [vmem:[%s1297_s8 + $0x18] sm:$0xff] %v866_v58   ;;  %938 = vst [vmem:[%s1297_s8 + $0x58] sm:$0xff] %v906_v59  }
  0xef   : > { %v384_v62 = vpop.f32.mrf.mxu0  ;;  %v464_v63 = vpop.f32.mrf.mxu1 }
  0xf0   : > { %v871_v0 = vpack.c.bf16 %v1001_v60, %v384_v62  ;;  %v911_v1 = vpack.c.bf16 %v1025_v61, %v464_v63 }
  0xf1   : > { %v1004_v2 = vpop.f32.mrf.mxu0  ;;  %v1028_v3 = vpop.f32.mrf.mxu1 }
  0xf2   : > { %931 = vst [vmem:[%s1297_s8 + $0x20] sm:$0xff] %v871_v0   ;;  %939 = vst [vmem:[%s1297_s8 + $0x60] sm:$0xff] %v911_v1  }
  0xf3   : > { %v394_v4 = vpop.f32.mrf.mxu0  ;;  %v474_v5 = vpop.f32.mrf.mxu1 }
  0xf4   : > { %v876_v6 = vpack.c.bf16 %v1004_v2, %v394_v4  ;;  %v916_v7 = vpack.c.bf16 %v1028_v3, %v474_v5 }
  0xf5   : > { %v1007_v8 = vpop.f32.mrf.mxu0  ;;  %v1031_v9 = vpop.f32.mrf.mxu1 }
  0xf6   : > { %932 = vst [vmem:[%s1297_s8 + $0x28] sm:$0xff] %v876_v6   ;;  %940 = vst [vmem:[%s1297_s8 + $0x68] sm:$0xff] %v916_v7  }
  0xf7   : > { %v404_v10 = vpop.f32.mrf.mxu0  ;;  %v484_v11 = vpop.f32.mrf.mxu1 }
  0xf8   : > { %v881_v12 = vpack.c.bf16 %v1007_v8, %v404_v10  ;;  %v921_v13 = vpack.c.bf16 %v1031_v9, %v484_v11 }
  0xf9   : > { %v1010_v14 = vpop.f32.mrf.mxu0  ;;  %v1034_v15 = vpop.f32.mrf.mxu1 }
  0xfa   : > { %933 = vst [vmem:[%s1297_s8 + $0x30] sm:$0xff] %v881_v12   ;;  %941 = vst [vmem:[%s1297_s8 + $0x70] sm:$0xff] %v921_v13  }
  0xfb   : > { %v414_v16 = vpop.f32.mrf.mxu0  ;;  %v494_v17 = vpop.f32.mrf.mxu1 }
  0xfc   : > { %v886_v18 = vpack.c.bf16 %v1010_v14, %v414_v16  ;;  %v926_v19 = vpack.c.bf16 %v1034_v15, %v494_v17 }
  0xfe   : > { %934 = vst [vmem:[%s1297_s8 + $0x38] sm:$0xff] %v886_v18   ;;  %942 = vst [vmem:[%s1297_s8 + $0x78] sm:$0xff] %v926_v19  }
  0xff   : > { %1097 = shalt.err (!%p1094_p3)
}
 0x100   : > { %s1098_s27 = scalar_lea.hbm %s1318_s22, 2048  ;;  %s1102_s30 = scalar_lea.hbm %s1368_s2, 4096 }
 0x101   : > { %p1099_p4 = scmp.ne.s32.totalorder %s1318_s22, %s1098_s27  ;;  %p1103_p9 = scmp.lt.s32.totalorder %s1318_s22, %s1368_s2 }
 0x102   : > { %p1104_p10 = scmp.lt.s32.totalorder %s1102_s30, %s1098_s27 }
 0x103   : > { %p1100_p7 = pnand %p1099_p4, %p1202_p5 }
 0x104   : > { %p1105_p11 = por %p1104_p10, %p1103_p9 }
 0x105   : > { %p1101_p8 = pneg %p1100_p7 }
 0x107   : > { %p1106_p12 = pnand %p1105_p11, %p1101_p8 }
 0x109   : > { %1109 = shalt.err (!%p1106_p12)
}
 0x10a   : > { %s1147_s5 = smov 64   ;;  %s1148_s6 = smov 4  }
 0x10b   : > { %1043 = dma.vmem_to_hbm [thread:$0]  (%p1202_p5), %s1320_s16, 2048, %s1318_s22, %s1326_s13, %s1147_s5, %s1147_s5, %s1148_s6  }
 0x10c PF: > { %p1049_p13 = scmp.ge.s32.totalorder %s1144_s12, 2  ;;  %s692_s7 = sand.u32 1, %s1132_s9  }
 0x10d   : > { %s693_s8 = scalar_lea.sflag [#allocation3], %s692_s7 }
 0x10e   : > { %p1046_p0 = pnand %p1049_p13, %p1206_p6 }
 0x110   : > { %p1047_p1 = pneg %p1046_p0 }
 0x112   : > { %1127 = dma.done.wait (%p1047_p1), %s693_s8, 2048  }
 0x113   : > { %1129 = vsyncadd (%p1047_p1), %s693_s8, 4294965248  ;;  %p12_p2 = scmp.ge.s32.totalorder %s1189_s15, 4   ;;  %s1371_s9 = smov %s1136_s10 }
 0x114   : > { %s1372_s10 = smov %s1140_s11  ;;  %s1373_s11 = smov %s1200_s18 }
 0x115   : > { %s1374_s12 = smov %s1189_s15  ;;  %14 = sbr.rel (!%p12_p2) target bundleno = 3 (0x3), region = 63 }
 0x11a   :  { %698 = vsyncpa [#allocation3], 1 }
 0x11b   :  { %700 = vsyncpa [#allocation3 + $0x1], 1 }

</bundles_post_ra>
